<compile_context>
chip_gen: v7x
topology: tpu7x:2x2x1
jax: 0.10.0
libtpu: 0.0.40
codegen_flags: <defaults>
</compile_context>

<pallas_src>
import jax
import jax.numpy as jnp
from jax.experimental import pallas as pl
from jax.experimental.pallas import tpu as pltpu


def gap_kernel(lo_ref, hi_ref,                       # scalar-prefetch (SMEM)
               x_ref, brow_ref, bcol_ref, w1_ref, b1_ref, w2_ref, b2_ref,
               part_ref, mz_ref, cnt_ref,            # outputs (per-core partials)
               m_s, z_s, acc_attn, acc_sum, acc_max, cnt_s):
    c = pl.program_id(0)                             # core / node-range index
    t = pl.program_id(1)                             # tile index within the range
    tpc = pl.num_programs(1)
    tile = c * tpc + t

    x = x_ref[...].astype(jnp.float32)               # [TN, Dp] (padded rows are 0)
    TN, Dp = x.shape
    G = acc_attn.shape[0]
    neg_inf = jnp.float32(-jnp.inf)

    # ---- init per-core accumulators on the first tile of this range ----
    @pl.when(t == 0)
    def _():
        m_s[...] = jnp.full_like(m_s, -jnp.inf)
        z_s[...] = jnp.zeros_like(z_s)
        acc_attn[...] = jnp.zeros_like(acc_attn)
        acc_sum[...] = jnp.zeros_like(acc_sum)
        acc_max[...] = jnp.full_like(acc_max, -jnp.inf)
        cnt_s[...] = jnp.zeros_like(cnt_s)

    # ---- attention MLP: Linear -> ReLU -> Linear(width 1 on VPU/XLU) ----
    h = jnp.dot(x, w1_ref[...], preferred_element_type=jnp.float32) + b1_ref[...]
    h = jnp.maximum(h, 0.0)                          # [TN, H]
    s = jnp.sum(h * w2_ref[...], axis=-1, keepdims=True) + b2_ref[0, 0]   # [TN, 1]

    # ---- membership / validity (padded nodes carry sentinel id == G) ----
    batch_row = brow_ref[...]                        # [1, TN] int32
    batch_col = bcol_ref[...]                        # [TN, 1] int32
    gid = jax.lax.broadcasted_iota(jnp.int32, (G, TN), 0)
    member_f = (gid == batch_row).astype(jnp.float32)       # [G, TN]
    valid = batch_col < G                                   # [TN, 1] bool

    # ---- online (global) softmax over VALID node scores only ----
    s_valid = jnp.where(valid, s, neg_inf)           # padded rows can't set the max
    m_old = m_s[...]                                 # [1, 1]
    m_new = jnp.maximum(m_old, jnp.max(s_valid))     # [1, 1]
    # Guards: a fully-padded tile (or empty range) keeps m == -inf; never NaN.
    m_safe = jnp.where(m_new > neg_inf, m_new, 0.0)
    alpha = jnp.where(m_old > neg_inf, jnp.exp(m_old - m_safe), 0.0)
    e = jnp.exp(s_valid - m_safe)                    # exactly 0 for padded rows

    # ---- segment sums: two MXU dots sharing the tiny one-hot LHS ----
    pooled_sum = jnp.dot(member_f, x, preferred_element_type=jnp.float32)       # [G, Dp]
    pooled_attn = jnp.dot(member_f, x * e, preferred_element_type=jnp.float32)  # [G, Dp]

    acc_sum[...] = acc_sum[...] + pooled_sum
    acc_attn[...] = alpha * acc_attn[...] + pooled_attn
    z_s[...] = alpha * z_s[...] + jnp.sum(e)
    m_s[...] = m_new
    cnt_s[...] = cnt_s[...] + jnp.sum(member_f, axis=1, keepdims=True)

    # ---- per-graph running max: only graphs present in this tile ----
    g_lo = lo_ref[tile]                              # SMEM scalar reads
    g_hi = hi_ref[tile]
    for g in range(G):                               # static loop, runtime-gated
        @pl.when(jnp.logical_and(g_lo <= g, g <= g_hi))
        def _(g=g):
            sel = batch_col == g                     # [TN, 1]
            gmax = jnp.max(jnp.where(sel, x, neg_inf), axis=0, keepdims=True)
            acc_max[g:g + 1, :] = jnp.maximum(acc_max[g:g + 1, :], gmax)

    # ---- finalize: write this core's lane-dense partial slabs ----
    @pl.when(t == tpc - 1)
    def _():
        part_ref[0, :, 0:Dp] = acc_attn[...]         # un-normalized numerator (rel. to m)
        part_ref[0, :, Dp:2 * Dp] = acc_max[...]
        part_ref[0, :, 2 * Dp:3 * Dp] = acc_sum[...]
        mz_ref[0, 0:1, 0:1] = m_s[...]
        mz_ref[0, 0:1, 1:2] = z_s[...]
        cnt_ref[0] = cnt_s[...]


def graph_attention_pooling(x, batch, w1, b1, w2, b2, num_graphs, tile_n=1024):
    """Pallas forward of GraphAttentionPooling. Returns [num_graphs, 3*D]."""
    x = jnp.asarray(x)
    if x.dtype not in (jnp.float32, jnp.bfloat16):
        x = x.astype(jnp.float32)                    # module semantics: compute in f32
    N, D = x.shape
    w1 = jnp.asarray(w1, jnp.float32)
    H = int(w1.shape[1])
    G = int(num_graphs)

    # Lane-dense feature padding and node-axis tiling.
    Dp = max(128, ((D + 127) // 128) * 128)
    row_align = 8 if x.dtype == jnp.float32 else 16  # bf16 sublane packing
    if N > tile_n:
        TN = max(128, (int(tile_n) // 128) * 128)    # multi-tile => lane-aligned TN
    else:
        TN = max(row_align, ((N + row_align - 1) // row_align) * row_align)

    num_tiles = -(-N // TN)
    C = 2 if num_tiles >= 2 else 1                   # v7x: one node range per TensorCore
    TPC = -(-num_tiles // C)                         # tiles per core
    total_tiles = C * TPC
    Np = total_tiles * TN

    batch = jnp.asarray(batch, jnp.int32)
    xp = jnp.pad(x, ((0, Np - N), (0, Dp - D)))
    batch_pad = jnp.pad(batch, (0, Np - N), constant_values=G)   # sentinel graph id
    batch_row = batch_pad.reshape(1, Np)
    batch_col = batch_pad.reshape(Np, 1)

    # Per-tile graph-id bounds for the max loop (scalar-prefetched into SMEM).
    bt = batch_pad.reshape(total_tiles, TN)
    vt = bt < G
    tile_lo = jnp.min(jnp.where(vt, bt, G), axis=1).astype(jnp.int32)    # G  if empty
    tile_hi = jnp.max(jnp.where(vt, bt, -1), axis=1).astype(jnp.int32)   # -1 if empty

    w1p = jnp.pad(w1, ((0, Dp - D), (0, 0)))
    b1r = jnp.asarray(b1, jnp.float32).reshape(1, H)
    w2r = jnp.asarray(w2, jnp.float32).reshape(1, H)
    b2s = jnp.asarray(b2, jnp.float32).reshape(1, 1)

    part, mz, cnt = pl.pallas_call(
        gap_kernel,
        out_shape=(
            jax.ShapeDtypeStruct((C, G, 3 * Dp), jnp.float32),   # [attn_num | max | sum]
            jax.ShapeDtypeStruct((C, 1, 2), jnp.float32),        # (m, Z) per core
            jax.ShapeDtypeStruct((C, G, 1), jnp.float32),        # counts per core
        ),
        grid_spec=pltpu.PrefetchScalarGridSpec(
            num_scalar_prefetch=2,
            grid=(C, TPC),
            in_specs=[
                pl.BlockSpec((TN, Dp), lambda c, t, lo, hi: (c * TPC + t, 0)),  # x tile
                pl.BlockSpec((1, TN), lambda c, t, lo, hi: (0, c * TPC + t)),   # batch row
                pl.BlockSpec((TN, 1), lambda c, t, lo, hi: (c * TPC + t, 0)),   # batch col
                pl.BlockSpec((Dp, H), lambda c, t, lo, hi: (0, 0)),             # W1 (resident)
                pl.BlockSpec((1, H), lambda c, t, lo, hi: (0, 0)),              # b1
                pl.BlockSpec((1, H), lambda c, t, lo, hi: (0, 0)),              # w2 row
                pl.BlockSpec(memory_space=pltpu.MemorySpace.SMEM),              # b2 scalar
            ],
            out_specs=[
                pl.BlockSpec((1, G, 3 * Dp), lambda c, t, lo, hi: (c, 0, 0)),
                pl.BlockSpec((1, 1, 2), lambda c, t, lo, hi: (c, 0, 0)),
                pl.BlockSpec((1, G, 1), lambda c, t, lo, hi: (c, 0, 0)),
            ],
            scratch_shapes=[
                pltpu.VMEM((1, 1), jnp.float32),     # running softmax max m
                pltpu.VMEM((1, 1), jnp.float32),     # running softmax Z
                pltpu.VMEM((G, Dp), jnp.float32),    # attention numerator
                pltpu.VMEM((G, Dp), jnp.float32),    # per-graph sum
                pltpu.VMEM((G, Dp), jnp.float32),    # per-graph max
                pltpu.VMEM((G, 1), jnp.float32),     # per-graph counts
            ],
        ),
        compiler_params=pltpu.CompilerParams(
            dimension_semantics=("parallel", "arbitrary"),   # cores x node tiles
            vmem_limit_bytes=32 * 1024 * 1024,
        ),
    )(tile_lo, tile_hi, xp, batch_row, batch_col, w1p, b1r, w2r, b2s)

    # ---- tiny JAX epilogue: merge the per-core online-softmax partials ----
    m_c = mz[:, 0, 0]                                # [C]
    z_c = mz[:, 0, 1]                                # [C]
    m = jnp.max(m_c)
    m_safe = jnp.where(m > -jnp.inf, m, 0.0)
    scale = jnp.where(m_c > -jnp.inf, jnp.exp(m_c - m_safe), 0.0)   # [C]
    z = jnp.sum(z_c * scale)
    inv_z = jnp.where(z > 0, 1.0 / z, 0.0)           # guard z == 0 (empty input)

    attn_pooled = jnp.sum(part[:, :, 0:Dp] * scale[:, None, None], axis=0) * inv_z
    max_pooled = jnp.max(part[:, :, Dp:2 * Dp], axis=0)
    sum_pooled = jnp.sum(part[:, :, 2 * Dp:3 * Dp], axis=0)
    counts = jnp.maximum(jnp.sum(cnt[:, :, 0], axis=0), 1.0)[:, None]
    mean_pooled = sum_pooled / counts
    # NOTE: graphs with zero nodes keep -inf in the max slab (same identity as
    # jax.ops.segment_max); a PyTorch scatter-into-zeros implementation yields 0.
    return jnp.concatenate(
        [attn_pooled[:, :D], max_pooled[:, :D], mean_pooled[:, :D]], axis=-1)


def reference_forward(x, batch, w1, b1, w2, b2, num_graphs):
    """Pure-JAX reference mirroring the PyTorch forward."""
    x = x.astype(jnp.float32)
    h = jnp.maximum(x @ w1 + b1[None, :], 0.0)
    scores = h @ w2 + b2[None, :]                         # [N, 1]
    attn_w = jax.nn.softmax(scores.reshape(-1)).reshape(scores.shape)
    wx = x * attn_w
    attn_pooled = jax.ops.segment_sum(wx, batch, num_graphs)
    max_pooled = jax.ops.segment_max(x, batch, num_graphs)
    sum_pooled = jax.ops.segment_sum(x, batch, num_graphs)
    counts = jnp.maximum(
        jnp.bincount(batch, length=num_graphs), 1).astype(jnp.float32)[:, None]
    mean_pooled = sum_pooled / counts
    return jnp.concatenate([attn_pooled, max_pooled, mean_pooled], axis=-1)


if __name__ == "__main__":
    # Small synthetic shapes: N=16 nodes, in_dim=8, hidden_dim=32, 2 graphs.
    N, IN_DIM, HIDDEN, NUM_GRAPHS = 16, 8, 32, 2

    key = jax.random.PRNGKey(0)
    kx, k1, k2, k3, k4 = jax.random.split(key, 5)

    x = jax.random.normal(kx, (N, IN_DIM), dtype=jnp.float32)
    # graph assignment: 7 nodes in graph 0, 9 nodes in graph 1
    batch = jnp.concatenate(
        [jnp.zeros((7,), jnp.int32), jnp.ones((9,), jnp.int32)])

    # Deterministic parameter init (PyTorch Linear-style uniform bounds).
    bound1 = 1.0 / (IN_DIM ** 0.5)
    bound2 = 1.0 / (HIDDEN ** 0.5)
    w1 = jax.random.uniform(k1, (IN_DIM, HIDDEN), jnp.float32, -bound1, bound1)
    b1 = jax.random.uniform(k2, (HIDDEN,), jnp.float32, -bound1, bound1)
    w2 = jax.random.uniform(k3, (HIDDEN, 1), jnp.float32, -bound2, bound2)
    b2 = jax.random.uniform(k4, (1,), jnp.float32, -bound2, bound2)

    out = jax.block_until_ready(
        graph_attention_pooling(x, batch, w1, b1, w2, b2, NUM_GRAPHS))
    ref = reference_forward(x, batch, w1, b1, w2, b2, NUM_GRAPHS)
    assert out.shape == (NUM_GRAPHS, 3 * IN_DIM)
    assert jnp.allclose(out, ref, atol=1e-5, rtol=1e-5), (out, ref)

    # Multi-tile check: tile_n=128 forces 6 node tiles, split 3+3 across the two
    # per-core ranges (exercises the online-softmax merge, the scalar-prefetched
    # per-tile graph bounds, and the padded last tile).
    N2, G2 = 700, 5
    kx2, kb2 = jax.random.split(jax.random.PRNGKey(1))
    x2 = jax.random.normal(kx2, (N2, IN_DIM), dtype=jnp.float32)
    batch2 = jnp.sort(jax.random.randint(kb2, (N2,), 0, G2).astype(jnp.int32))
    out2 = jax.block_until_ready(
        graph_attention_pooling(x2, batch2, w1, b1, w2, b2, G2, tile_n=128))
    ref2 = reference_forward(x2, batch2, w1, b1, w2, b2, G2)
    assert jnp.allclose(out2, ref2, atol=1e-4, rtol=1e-4), (out2, ref2)

    # bf16-streaming check (native-dtype DMA, exact cast to f32 in the kernel).
    x3 = x2.astype(jnp.bfloat16)
    out3 = jax.block_until_ready(
        graph_attention_pooling(x3, batch2, w1, b1, w2, b2, G2, tile_n=128))
    ref3 = reference_forward(x3.astype(jnp.float32), batch2, w1, b1, w2, b2, G2)
    assert jnp.allclose(out3, ref3, atol=1e-4, rtol=1e-4), (out3, ref3)

    print("KERNEL_OK")
</pallas_src>

<mosaic_0001>
module attributes {stable_mosaic.version = 11 : i64} {
  func.func @gap_kernel(%arg0: i32, %arg1: i32, %arg2: memref<1xi32, #tpu.memory_space<smem>>, %arg3: memref<1xi32, #tpu.memory_space<smem>>, %arg4: memref<16x128xf32, #tpu.memory_space<vmem>>, %arg5: memref<1x16xi32, #tpu.memory_space<vmem>>, %arg6: memref<16x1xi32, #tpu.memory_space<vmem>>, %arg7: memref<128x32xf32, #tpu.memory_space<vmem>>, %arg8: memref<1x32xf32, #tpu.memory_space<vmem>>, %arg9: memref<1x32xf32, #tpu.memory_space<vmem>>, %arg10: memref<1x1xf32, #tpu.memory_space<smem>>, %arg11: memref<1x2x384xf32, #tpu.memory_space<vmem>>, %arg12: memref<1x1x2xf32, #tpu.memory_space<vmem>>, %arg13: memref<1x2x1xf32, #tpu.memory_space<vmem>>, %arg14: memref<1x1xf32, #tpu.memory_space<vmem>>, %arg15: memref<1x1xf32, #tpu.memory_space<vmem>>, %arg16: memref<2x128xf32, #tpu.memory_space<vmem>>, %arg17: memref<2x128xf32, #tpu.memory_space<vmem>>, %arg18: memref<2x128xf32, #tpu.memory_space<vmem>>, %arg19: memref<2x1xf32, #tpu.memory_space<vmem>>) attributes {dimension_semantics = [#tpu.dimension_semantics<parallel>, #tpu.dimension_semantics<arbitrary>], iteration_bounds = array<i64: 1, 1>, scalar_prefetch = 2 : i64, scratch_operands = 6 : i64, tpu.core_type = #tpu.core_type<tc>, window_params = [{transform_indices = @transform_0, window_bounds = array<i64: 16, 128>}, {transform_indices = @transform_1, window_bounds = array<i64: 1, 16>}, {transform_indices = @transform_2, window_bounds = array<i64: 16, 1>}, {pipeline_mode = #tpu.pipeline_mode<synchronous>, transform_indices = @transform_3, window_bounds = array<i64: 128, 32>}, {pipeline_mode = #tpu.pipeline_mode<synchronous>, transform_indices = @transform_4, window_bounds = array<i64: 1, 32>}, {pipeline_mode = #tpu.pipeline_mode<synchronous>, transform_indices = @transform_5, window_bounds = array<i64: 1, 32>}, {transform_indices = @transform_6, window_bounds = array<i64: 1, 1>}, {transform_indices = @transform_7, window_bounds = array<i64: 1, 2, 384>}, {transform_indices = @transform_8, window_bounds = array<i64: 1, 1, 2>}, {transform_indices = @transform_9, window_bounds = array<i64: 1, 2, 1>}]} {
    %c1_i32 = arith.constant 1 : i32
    %0 = arith.muli %arg0, %c1_i32 : i32
    %1 = arith.addi %0, %arg1 : i32
    %c0 = arith.constant 0 : index
    %c0_0 = arith.constant 0 : index
    %2 = vector.load %arg4[%c0, %c0_0] : memref<16x128xf32, #tpu.memory_space<vmem>>, vector<16x128xf32>
    %c0_i32 = arith.constant 0 : i32
    %3 = arith.cmpi eq, %arg1, %c0_i32 : i32
    %4 = arith.extui %3 : i1 to i32
    %c0_i32_1 = arith.constant 0 : i32
    %5 = arith.cmpi ne, %4, %c0_i32_1 : i32
    scf.if %5 {
      %cst_56 = arith.constant 0xFF800000 : f32
      %96 = vector.broadcast %cst_56 : f32 to vector<1x1xf32>
      %c0_57 = arith.constant 0 : index
      %c0_58 = arith.constant 0 : index
      %97 = vector.load %arg14[%c0_57, %c0_58] : memref<1x1xf32, #tpu.memory_space<vmem>>, vector<1x1xf32>
      tpu.vector_store %arg14[%c0_57, %c0_58], %96 {strides = array<i32>} : memref<1x1xf32, #tpu.memory_space<vmem>>, vector<1x1xf32>,
      %cst_59 = arith.constant 0.000000e+00 : f32
      %98 = vector.broadcast %cst_59 : f32 to vector<1x1xf32>
      %c0_60 = arith.constant 0 : index
      %c0_61 = arith.constant 0 : index
      %99 = vector.load %arg15[%c0_60, %c0_61] : memref<1x1xf32, #tpu.memory_space<vmem>>, vector<1x1xf32>
      tpu.vector_store %arg15[%c0_60, %c0_61], %98 {strides = array<i32>} : memref<1x1xf32, #tpu.memory_space<vmem>>, vector<1x1xf32>,
      %cst_62 = arith.constant 0.000000e+00 : f32
      %100 = vector.broadcast %cst_62 : f32 to vector<2x128xf32>
      %c0_63 = arith.constant 0 : index
      %c0_64 = arith.constant 0 : index
      %101 = vector.load %arg16[%c0_63, %c0_64] : memref<2x128xf32, #tpu.memory_space<vmem>>, vector<2x128xf32>
      tpu.vector_store %arg16[%c0_63, %c0_64], %100 {strides = array<i32>} : memref<2x128xf32, #tpu.memory_space<vmem>>, vector<2x128xf32>,
      %cst_65 = arith.constant 0.000000e+00 : f32
      %102 = vector.broadcast %cst_65 : f32 to vector<2x128xf32>
      %c0_66 = arith.constant 0 : index
      %c0_67 = arith.constant 0 : index
      %103 = vector.load %arg17[%c0_66, %c0_67] : memref<2x128xf32, #tpu.memory_space<vmem>>, vector<2x128xf32>
      tpu.vector_store %arg17[%c0_66, %c0_67], %102 {strides = array<i32>} : memref<2x128xf32, #tpu.memory_space<vmem>>, vector<2x128xf32>,
      %cst_68 = arith.constant 0xFF800000 : f32
      %104 = vector.broadcast %cst_68 : f32 to vector<2x128xf32>
      %c0_69 = arith.constant 0 : index
      %c0_70 = arith.constant 0 : index
      %105 = vector.load %arg18[%c0_69, %c0_70] : memref<2x128xf32, #tpu.memory_space<vmem>>, vector<2x128xf32>
      tpu.vector_store %arg18[%c0_69, %c0_70], %104 {strides = array<i32>} : memref<2x128xf32, #tpu.memory_space<vmem>>, vector<2x128xf32>,
      %cst_71 = arith.constant 0.000000e+00 : f32
      %106 = vector.broadcast %cst_71 : f32 to vector<2x1xf32>
      %c0_72 = arith.constant 0 : index
      %c0_73 = arith.constant 0 : index
      %107 = vector.load %arg19[%c0_72, %c0_73] : memref<2x1xf32, #tpu.memory_space<vmem>>, vector<2x1xf32>
      tpu.vector_store %arg19[%c0_72, %c0_73], %106 {strides = array<i32>} : memref<2x1xf32, #tpu.memory_space<vmem>>, vector<2x1xf32>,
    } else {
    }
    %c0_2 = arith.constant 0 : index
    %c0_3 = arith.constant 0 : index
    %6 = vector.load %arg7[%c0_2, %c0_3] : memref<128x32xf32, #tpu.memory_space<vmem>>, vector<128x32xf32>
    %cst = arith.constant dense<0.000000e+00> : vector<16x32xf32>
    %7 = tpu.matmul %2, %6, %cst {dimension_numbers = #tpu.dot_dimension_numbers<[1], [0], [0], [1], [0, 0, 1, 1], [], []>} : vector<16x128xf32>, vector<128x32xf32>, vector<16x32xf32> -> vector<16x32xf32>
    %c0_4 = arith.constant 0 : index
    %c0_5 = arith.constant 0 : index
    %8 = vector.load %arg8[%c0_4, %c0_5] : memref<1x32xf32, #tpu.memory_space<vmem>>, vector<1x32xf32>
    %9 = vector.broadcast %8 : vector<1x32xf32> to vector<16x32xf32>
    %10 = arith.addf %7, %9 : vector<16x32xf32>
    %cst_6 = arith.constant 0.000000e+00 : f32
    %11 = vector.broadcast %cst_6 : f32 to vector<16x32xf32>
    %12 = arith.maximumf %10, %11 : vector<16x32xf32>
    %c0_7 = arith.constant 0 : index
    %c0_8 = arith.constant 0 : index
    %13 = vector.load %arg9[%c0_7, %c0_8] : memref<1x32xf32, #tpu.memory_space<vmem>>, vector<1x32xf32>
    %14 = vector.broadcast %13 : vector<1x32xf32> to vector<16x32xf32>
    %15 = arith.mulf %12, %14 : vector<16x32xf32>
    %cst_9 = arith.constant dense<0.000000e+00> : vector<16xf32>
    %16 = vector.multi_reduction <add>, %15, %cst_9 [1] : vector<16x32xf32> to vector<16xf32>
    %17 = vector.shape_cast %16 : vector<16xf32> to vector<16x1xf32>
    %c0_10 = arith.constant 0 : index
    %c0_11 = arith.constant 0 : index
    %18 = memref.load %arg10[%c0_10, %c0_11] : memref<1x1xf32, #tpu.memory_space<smem>>
    %19 = vector.broadcast %18 : f32 to vector<16x1xf32>
    %20 = arith.addf %17, %19 : vector<16x1xf32>
    %c0_12 = arith.constant 0 : index
    %c0_13 = arith.constant 0 : index
    %21 = vector.load %arg5[%c0_12, %c0_13] : memref<1x16xi32, #tpu.memory_space<vmem>>, vector<1x16xi32>
    %c0_14 = arith.constant 0 : index
    %c0_15 = arith.constant 0 : index
    %22 = vector.load %arg6[%c0_14, %c0_15] : memref<16x1xi32, #tpu.memory_space<vmem>>, vector<16x1xi32>
    %23 = tpu.iota {dimensions = array<i32: 0>} : vector<2x16xi32>
    %24 = vector.broadcast %21 : vector<1x16xi32> to vector<2x16xi32>
    %25 = arith.cmpi eq, %23, %24 : vector<2x16xi32>
    %26 = arith.extui %25 : vector<2x16xi1> to vector<2x16xi32>
    %27 = arith.sitofp %26 : vector<2x16xi32> to vector<2x16xf32>
    %c2_i32 = arith.constant 2 : i32
    %28 = vector.broadcast %c2_i32 : i32 to vector<16x1xi32>
    %29 = arith.cmpi slt, %22, %28 : vector<16x1xi32>
    %cst_16 = arith.constant 0xFF800000 : f32
    %30 = vector.broadcast %cst_16 : f32 to vector<16x1xf32>
    %31 = arith.select %29, %20, %30 : vector<16x1xi1>, vector<16x1xf32>
    %c0_17 = arith.constant 0 : index
    %c0_18 = arith.constant 0 : index
    %32 = vector.load %arg14[%c0_17, %c0_18] : memref<1x1xf32, #tpu.memory_space<vmem>>, vector<1x1xf32>
    %33 = vector.shape_cast %31 : vector<16x1xf32> to vector<1x16x1xf32>
    %cst_19 = arith.constant dense<0xFF800000> : vector<1xf32>
    %34 = vector.multi_reduction <maximumf>, %33, %cst_19 [1, 2] : vector<1x16x1xf32> to vector<1xf32>
    %35 = vector.shape_cast %34 : vector<1xf32> to vector<1x1x1xf32>
    %36 = vector.extract %35[0, 0, 0] : f32 from vector<1x1x1xf32>
    %37 = vector.broadcast %36 : f32 to vector<1x1xf32>
    %38 = arith.maximumf %32, %37 : vector<1x1xf32>
    %cst_20 = arith.constant 0xFF800000 : f32
    %39 = vector.broadcast %cst_20 : f32 to vector<1x1xf32>
    %40 = arith.cmpf ogt, %38, %39 : vector<1x1xf32>
    %cst_21 = arith.constant 0.000000e+00 : f32
    %41 = vector.broadcast %cst_21 : f32 to vector<1x1xf32>
    %42 = arith.select %40, %38, %41 : vector<1x1xi1>, vector<1x1xf32>
    %cst_22 = arith.constant 0xFF800000 : f32
    %43 = vector.broadcast %cst_22 : f32 to vector<1x1xf32>
    %44 = arith.cmpf ogt, %32, %43 : vector<1x1xf32>
    %45 = arith.subf %32, %42 : vector<1x1xf32>
    %46 = math.exp %45 : vector<1x1xf32>
    %cst_23 = arith.constant 0.000000e+00 : f32
    %47 = vector.broadcast %cst_23 : f32 to vector<1x1xf32>
    %48 = arith.select %44, %46, %47 : vector<1x1xi1>, vector<1x1xf32>
    %49 = vector.broadcast %42 : vector<1x1xf32> to vector<16x1xf32>
    %50 = arith.subf %31, %49 : vector<16x1xf32>
    %51 = math.exp %50 : vector<16x1xf32>
    %cst_24 = arith.constant dense<0.000000e+00> : vector<2x128xf32>
    %52 = tpu.matmul %27, %2, %cst_24 {dimension_numbers = #tpu.dot_dimension_numbers<[1], [0], [0], [1], [0, 0, 1, 1], [], []>} : vector<2x16xf32>, vector<16x128xf32>, vector<2x128xf32> -> vector<2x128xf32>
    %53 = vector.broadcast %51 : vector<16x1xf32> to vector<16x128xf32>
    %54 = arith.mulf %2, %53 : vector<16x128xf32>
    %cst_25 = arith.constant dense<0.000000e+00> : vector<2x128xf32>
    %55 = tpu.matmul %27, %54, %cst_25 {dimension_numbers = #tpu.dot_dimension_numbers<[1], [0], [0], [1], [0, 0, 1, 1], [], []>} : vector<2x16xf32>, vector<16x128xf32>, vector<2x128xf32> -> vector<2x128xf32>
    %c0_26 = arith.constant 0 : index
    %c0_27 = arith.constant 0 : index
    %56 = vector.load %arg17[%c0_26, %c0_27] : memref<2x128xf32, #tpu.memory_space<vmem>>, vector<2x128xf32>
    %57 = arith.addf %56, %52 : vector<2x128xf32>
    %c0_28 = arith.constant 0 : index
    %c0_29 = arith.constant 0 : index
    %58 = vector.load %arg17[%c0_28, %c0_29] : memref<2x128xf32, #tpu.memory_space<vmem>>, vector<2x128xf32>
    tpu.vector_store %arg17[%c0_28, %c0_29], %57 {strides = array<i32>} : memref<2x128xf32, #tpu.memory_space<vmem>>, vector<2x128xf32>,
    %c0_30 = arith.constant 0 : index
    %c0_31 = arith.constant 0 : index
    %59 = vector.load %arg16[%c0_30, %c0_31] : memref<2x128xf32, #tpu.memory_space<vmem>>, vector<2x128xf32>
    %60 = vector.broadcast %48 : vector<1x1xf32> to vector<2x128xf32>
    %61 = arith.mulf %60, %59 : vector<2x128xf32>
    %62 = arith.addf %61, %55 : vector<2x128xf32>
    %c0_32 = arith.constant 0 : index
    %c0_33 = arith.constant 0 : index
    %63 = vector.load %arg16[%c0_32, %c0_33] : memref<2x128xf32, #tpu.memory_space<vmem>>, vector<2x128xf32>
    tpu.vector_store %arg16[%c0_32, %c0_33], %62 {strides = array<i32>} : memref<2x128xf32, #tpu.memory_space<vmem>>, vector<2x128xf32>,
    %c0_34 = arith.constant 0 : index
    %c0_35 = arith.constant 0 : index
    %64 = vector.load %arg15[%c0_34, %c0_35] : memref<1x1xf32, #tpu.memory_space<vmem>>, vector<1x1xf32>
    %65 = arith.mulf %48, %64 : vector<1x1xf32>
    %66 = vector.shape_cast %51 : vector<16x1xf32> to vector<1x16x1xf32>
    %cst_36 = arith.constant dense<0.000000e+00> : vector<1xf32>
    %67 = vector.multi_reduction <add>, %66, %cst_36 [1, 2] : vector<1x16x1xf32> to vector<1xf32>
    %68 = vector.shape_cast %67 : vector<1xf32> to vector<1x1x1xf32>
    %69 = vector.extract %68[0, 0, 0] : f32 from vector<1x1x1xf32>
    %70 = vector.broadcast %69 : f32 to vector<1x1xf32>
    %71 = arith.addf %65, %70 : vector<1x1xf32>
    %c0_37 = arith.constant 0 : index
    %c0_38 = arith.constant 0 : index
    %72 = vector.load %arg15[%c0_37, %c0_38] : memref<1x1xf32, #tpu.memory_space<vmem>>, vector<1x1xf32>
    tpu.vector_store %arg15[%c0_37, %c0_38], %71 {strides = array<i32>} : memref<1x1xf32, #tpu.memory_space<vmem>>, vector<1x1xf32>,
    %c0_39 = arith.constant 0 : index
    %c0_40 = arith.constant 0 : index
    %73 = vector.load %arg14[%c0_39, %c0_40] : memref<1x1xf32, #tpu.memory_space<vmem>>, vector<1x1xf32>
    tpu.vector_store %arg14[%c0_39, %c0_40], %38 {strides = array<i32>} : memref<1x1xf32, #tpu.memory_space<vmem>>, vector<1x1xf32>,
    %c0_41 = arith.constant 0 : index
    %c0_42 = arith.constant 0 : index
    %74 = vector.load %arg19[%c0_41, %c0_42] : memref<2x1xf32, #tpu.memory_space<vmem>>, vector<2x1xf32>
    %cst_43 = arith.constant dense<0.000000e+00> : vector<2xf32>
    %75 = vector.multi_reduction <add>, %27, %cst_43 [1] : vector<2x16xf32> to vector<2xf32>
    %76 = vector.shape_cast %75 : vector<2xf32> to vector<2x1xf32>
    %77 = arith.addf %74, %76 : vector<2x1xf32>
    %c0_44 = arith.constant 0 : index
    %c0_45 = arith.constant 0 : index
    %78 = vector.load %arg19[%c0_44, %c0_45] : memref<2x1xf32, #tpu.memory_space<vmem>>, vector<2x1xf32>
    tpu.vector_store %arg19[%c0_44, %c0_45], %77 {strides = array<i32>} : memref<2x1xf32, #tpu.memory_space<vmem>>, vector<2x1xf32>,
    %79 = arith.index_cast %1 : i32 to index
    %80 = memref.load %arg2[%79] : memref<1xi32, #tpu.memory_space<smem>>
    %81 = arith.index_cast %1 : i32 to index
    %82 = memref.load %arg3[%81] : memref<1xi32, #tpu.memory_space<smem>>
    %c0_i32_46 = arith.constant 0 : i32
    %83 = arith.cmpi sle, %80, %c0_i32_46 : i32
    %c0_i32_47 = arith.constant 0 : i32
    %84 = arith.cmpi sge, %82, %c0_i32_47 : i32
    %85 = arith.andi %83, %84 : i1
    %86 = arith.extui %85 : i1 to i32
    %cst_48 = arith.constant 0xFF800000 : f32
    %c0_i32_49 = arith.constant 0 : i32
    %87 = arith.cmpi ne, %86, %c0_i32_49 : i32
    scf.if %87 {
      %c0_i32_56 = arith.constant 0 : i32
      %96 = vector.broadcast %c0_i32_56 : i32 to vector<16x1xi32>
      %97 = arith.cmpi eq, %22, %96 : vector<16x1xi32>
      %98 = vector.shape_cast %97 : vector<16x1xi1> to vector<16x1xi1>
      %99 = vector.broadcast %98 : vector<16x1xi1> to vector<16x128xi1>
      %100 = vector.broadcast %cst_48 : f32 to vector<16x128xf32>
      %101 = arith.select %99, %2, %100 : vector<16x128xi1>, vector<16x128xf32>
      %cst_57 = arith.constant dense<0xFF800000> : vector<128xf32>
      %102 = vector.multi_reduction <maximumf>, %101, %cst_57 [0] : vector<16x128xf32> to vector<128xf32>
      %103 = vector.shape_cast %102 : vector<128xf32> to vector<1x128xf32>
      %c0_58 = arith.constant 0 : index
      %c0_59 = arith.constant 0 : index
      %104 = vector.load %arg18[%c0_58, %c0_59] : memref<2x128xf32, #tpu.memory_space<vmem>>, vector<1x128xf32>
      %105 = arith.maximumf %104, %103 : vector<1x128xf32>
      %c0_60 = arith.constant 0 : index
      %c0_61 = arith.constant 0 : index
      %106 = vector.load %arg18[%c0_60, %c0_61] : memref<2x128xf32, #tpu.memory_space<vmem>>, vector<1x128xf32>
      tpu.vector_store %arg18[%c0_60, %c0_61], %105 {strides = array<i32>} : memref<2x128xf32, #tpu.memory_space<vmem>>, vector<1x128xf32>,
    } else {
    }
    %c1_i32_50 = arith.constant 1 : i32
    %88 = arith.cmpi sle, %80, %c1_i32_50 : i32
    %c1_i32_51 = arith.constant 1 : i32
    %89 = arith.cmpi sge, %82, %c1_i32_51 : i32
    %90 = arith.andi %88, %89 : i1
    %91 = arith.extui %90 : i1 to i32
    %cst_52 = arith.constant 0xFF800000 : f32
    %c0_i32_53 = arith.constant 0 : i32
    %92 = arith.cmpi ne, %91, %c0_i32_53 : i32
    scf.if %92 {
      %c1_i32_56 = arith.constant 1 : i32
      %96 = vector.broadcast %c1_i32_56 : i32 to vector<16x1xi32>
      %97 = arith.cmpi eq, %22, %96 : vector<16x1xi32>
      %98 = vector.shape_cast %97 : vector<16x1xi1> to vector<16x1xi1>
      %99 = vector.broadcast %98 : vector<16x1xi1> to vector<16x128xi1>
      %100 = vector.broadcast %cst_52 : f32 to vector<16x128xf32>
      %101 = arith.select %99, %2, %100 : vector<16x128xi1>, vector<16x128xf32>
      %cst_57 = arith.constant dense<0xFF800000> : vector<128xf32>
      %102 = vector.multi_reduction <maximumf>, %101, %cst_57 [0] : vector<16x128xf32> to vector<128xf32>
      %103 = vector.shape_cast %102 : vector<128xf32> to vector<1x128xf32>
      %c1 = arith.constant 1 : index
      %c0_58 = arith.constant 0 : index
      %104 = vector.load %arg18[%c1, %c0_58] : memref<2x128xf32, #tpu.memory_space<vmem>>, vector<1x128xf32>
      %105 = arith.maximumf %104, %103 : vector<1x128xf32>
      %c1_59 = arith.constant 1 : index
      %c0_60 = arith.constant 0 : index
      %106 = vector.load %arg18[%c1_59, %c0_60] : memref<2x128xf32, #tpu.memory_space<vmem>>, vector<1x128xf32>
      tpu.vector_store %arg18[%c1_59, %c0_60], %105 {strides = array<i32>} : memref<2x128xf32, #tpu.memory_space<vmem>>, vector<1x128xf32>,
    } else {
    }
    %c0_i32_54 = arith.constant 0 : i32
    %93 = arith.cmpi eq, %arg1, %c0_i32_54 : i32
    %94 = arith.extui %93 : i1 to i32
    %c0_i32_55 = arith.constant 0 : i32
    %95 = arith.cmpi ne, %94, %c0_i32_55 : i32
    scf.if %95 {
      %c0_56 = arith.constant 0 : index
      %c0_57 = arith.constant 0 : index
      %96 = vector.load %arg16[%c0_56, %c0_57] : memref<2x128xf32, #tpu.memory_space<vmem>>, vector<2x128xf32>
      %c0_58 = arith.constant 0 : index
      %c0_59 = arith.constant 0 : index
      %c0_60 = arith.constant 0 : index
      %97 = vector.load %arg11[%c0_58, %c0_59, %c0_60] : memref<1x2x384xf32, #tpu.memory_space<vmem>>, vector<1x2x128xf32>
      %98 = vector.shape_cast %97 : vector<1x2x128xf32> to vector<2x128xf32>
      %99 = vector.shape_cast %96 : vector<2x128xf32> to vector<1x2x128xf32>
      tpu.vector_store %arg11[%c0_58, %c0_59, %c0_60], %99 {strides = array<i32>} : memref<1x2x384xf32, #tpu.memory_space<vmem>>, vector<1x2x128xf32>,
      %c0_61 = arith.constant 0 : index
      %c0_62 = arith.constant 0 : index
      %100 = vector.load %arg18[%c0_61, %c0_62] : memref<2x128xf32, #tpu.memory_space<vmem>>, vector<2x128xf32>
      %c0_63 = arith.constant 0 : index
      %c0_64 = arith.constant 0 : index
      %c128 = arith.constant 128 : index
      %101 = vector.load %arg11[%c0_63, %c0_64, %c128] : memref<1x2x384xf32, #tpu.memory_space<vmem>>, vector<1x2x128xf32>
      %102 = vector.shape_cast %101 : vector<1x2x128xf32> to vector<2x128xf32>
      %103 = vector.shape_cast %100 : vector<2x128xf32> to vector<1x2x128xf32>
      tpu.vector_store %arg11[%c0_63, %c0_64, %c128], %103 {strides = array<i32>} : memref<1x2x384xf32, #tpu.memory_space<vmem>>, vector<1x2x128xf32>,
      %c0_65 = arith.constant 0 : index
      %c0_66 = arith.constant 0 : index
      %104 = vector.load %arg17[%c0_65, %c0_66] : memref<2x128xf32, #tpu.memory_space<vmem>>, vector<2x128xf32>
      %c0_67 = arith.constant 0 : index
      %c0_68 = arith.constant 0 : index
      %c256 = arith.constant 256 : index
      %105 = vector.load %arg11[%c0_67, %c0_68, %c256] : memref<1x2x384xf32, #tpu.memory_space<vmem>>, vector<1x2x128xf32>
      %106 = vector.shape_cast %105 : vector<1x2x128xf32> to vector<2x128xf32>
      %107 = vector.shape_cast %104 : vector<2x128xf32> to vector<1x2x128xf32>
      tpu.vector_store %arg11[%c0_67, %c0_68, %c256], %107 {strides = array<i32>} : memref<1x2x384xf32, #tpu.memory_space<vmem>>, vector<1x2x128xf32>,
      %c0_69 = arith.constant 0 : index
      %c0_70 = arith.constant 0 : index
      %108 = vector.load %arg14[%c0_69, %c0_70] : memref<1x1xf32, #tpu.memory_space<vmem>>, vector<1x1xf32>
      %c0_71 = arith.constant 0 : index
      %c0_72 = arith.constant 0 : index
      %c0_73 = arith.constant 0 : index
      %109 = vector.load %arg12[%c0_71, %c0_72, %c0_73] : memref<1x1x2xf32, #tpu.memory_space<vmem>>, vector<1x1x1xf32>
      %110 = vector.shape_cast %109 : vector<1x1x1xf32> to vector<1x1xf32>
      %111 = vector.shape_cast %108 : vector<1x1xf32> to vector<1x1x1xf32>
      tpu.vector_store %arg12[%c0_71, %c0_72, %c0_73], %111 {strides = array<i32>} : memref<1x1x2xf32, #tpu.memory_space<vmem>>, vector<1x1x1xf32>,
      %c0_74 = arith.constant 0 : index
      %c0_75 = arith.constant 0 : index
      %112 = vector.load %arg15[%c0_74, %c0_75] : memref<1x1xf32, #tpu.memory_space<vmem>>, vector<1x1xf32>
      %c0_76 = arith.constant 0 : index
      %c0_77 = arith.constant 0 : index
      %c1 = arith.constant 1 : index
      %113 = vector.load %arg12[%c0_76, %c0_77, %c1] : memref<1x1x2xf32, #tpu.memory_space<vmem>>, vector<1x1x1xf32>
      %114 = vector.shape_cast %113 : vector<1x1x1xf32> to vector<1x1xf32>
      %115 = vector.shape_cast %112 : vector<1x1xf32> to vector<1x1x1xf32>
      tpu.vector_store %arg12[%c0_76, %c0_77, %c1], %115 {strides = array<i32>} : memref<1x1x2xf32, #tpu.memory_space<vmem>>, vector<1x1x1xf32>,
      %c0_78 = arith.constant 0 : index
      %c0_79 = arith.constant 0 : index
      %116 = vector.load %arg19[%c0_78, %c0_79] : memref<2x1xf32, #tpu.memory_space<vmem>>, vector<2x1xf32>
      %c0_80 = arith.constant 0 : index
      %c0_81 = arith.constant 0 : index
      %c0_82 = arith.constant 0 : index
      %117 = vector.load %arg13[%c0_80, %c0_81, %c0_82] : memref<1x2x1xf32, #tpu.memory_space<vmem>>, vector<1x2x1xf32>
      %118 = vector.shape_cast %117 : vector<1x2x1xf32> to vector<2x1xf32>
      %119 = vector.shape_cast %116 : vector<2x1xf32> to vector<1x2x1xf32>
      tpu.vector_store %arg13[%c0_80, %c0_81, %c0_82], %119 {strides = array<i32>} : memref<1x2x1xf32, #tpu.memory_space<vmem>>, vector<1x2x1xf32>,
    } else {
    }
    return
  }
  func.func @transform_0(%arg0: i32, %arg1: i32, %arg2: memref<1xi32, #tpu.memory_space<smem>>, %arg3: memref<1xi32, #tpu.memory_space<smem>>) -> (i32, i32) {
    %c1_i32 = arith.constant 1 : i32
    %0 = arith.muli %arg0, %c1_i32 : i32
    %1 = arith.addi %0, %arg1 : i32
    %c0_i32 = arith.constant 0 : i32
    %c0_i32_0 = arith.constant 0 : i32
    return %1, %c0_i32 : i32, i32
  }
  func.func @transform_1(%arg0: i32, %arg1: i32, %arg2: memref<1xi32, #tpu.memory_space<smem>>, %arg3: memref<1xi32, #tpu.memory_space<smem>>) -> (i32, i32) {
    %c1_i32 = arith.constant 1 : i32
    %0 = arith.muli %arg0, %c1_i32 : i32
    %1 = arith.addi %0, %arg1 : i32
    %c0_i32 = arith.constant 0 : i32
    %c0_i32_0 = arith.constant 0 : i32
    return %c0_i32, %1 : i32, i32
  }
  func.func @transform_2(%arg0: i32, %arg1: i32, %arg2: memref<1xi32, #tpu.memory_space<smem>>, %arg3: memref<1xi32, #tpu.memory_space<smem>>) -> (i32, i32) {
    %c1_i32 = arith.constant 1 : i32
    %0 = arith.muli %arg0, %c1_i32 : i32
    %1 = arith.addi %0, %arg1 : i32
    %c0_i32 = arith.constant 0 : i32
    %c0_i32_0 = arith.constant 0 : i32
    return %1, %c0_i32 : i32, i32
  }
  func.func @transform_3(%arg0: i32, %arg1: i32, %arg2: memref<1xi32, #tpu.memory_space<smem>>, %arg3: memref<1xi32, #tpu.memory_space<smem>>) -> (i32, i32) {
    %c0_i32 = arith.constant 0 : i32
    %c0_i32_0 = arith.constant 0 : i32
    %c0_i32_1 = arith.constant 0 : i32
    return %c0_i32, %c0_i32_0 : i32, i32
  }
  func.func @transform_4(%arg0: i32, %arg1: i32, %arg2: memref<1xi32, #tpu.memory_space<smem>>, %arg3: memref<1xi32, #tpu.memory_space<smem>>) -> (i32, i32) {
    %c0_i32 = arith.constant 0 : i32
    %c0_i32_0 = arith.constant 0 : i32
    %c0_i32_1 = arith.constant 0 : i32
    return %c0_i32, %c0_i32_0 : i32, i32
  }
  func.func @transform_5(%arg0: i32, %arg1: i32, %arg2: memref<1xi32, #tpu.memory_space<smem>>, %arg3: memref<1xi32, #tpu.memory_space<smem>>) -> (i32, i32) {
    %c0_i32 = arith.constant 0 : i32
    %c0_i32_0 = arith.constant 0 : i32
    %c0_i32_1 = arith.constant 0 : i32
    return %c0_i32, %c0_i32_0 : i32, i32
  }
  func.func @transform_6(%arg0: i32, %arg1: i32, %arg2: memref<1xi32, #tpu.memory_space<smem>>, %arg3: memref<1xi32, #tpu.memory_space<smem>>) -> (i32, i32) {
    %c0_i32 = arith.constant 0 : i32
    %c0_i32_0 = arith.constant 0 : i32
    %c0_i32_1 = arith.constant 0 : i32
    return %c0_i32, %c0_i32_0 : i32, i32
  }
  func.func @transform_7(%arg0: i32, %arg1: i32, %arg2: memref<1xi32, #tpu.memory_space<smem>>, %arg3: memref<1xi32, #tpu.memory_space<smem>>) -> (i32, i32, i32) {
    %c0_i32 = arith.constant 0 : i32
    %c0_i32_0 = arith.constant 0 : i32
    %c0_i32_1 = arith.constant 0 : i32
    return %arg0, %c0_i32, %c0_i32_0 : i32, i32, i32
  }
  func.func @transform_8(%arg0: i32, %arg1: i32, %arg2: memref<1xi32, #tpu.memory_space<smem>>, %arg3: memref<1xi32, #tpu.memory_space<smem>>) -> (i32, i32, i32) {
    %c0_i32 = arith.constant 0 : i32
    %c0_i32_0 = arith.constant 0 : i32
    %c0_i32_1 = arith.constant 0 : i32
    return %arg0, %c0_i32, %c0_i32_0 : i32, i32, i32
  }
  func.func @transform_9(%arg0: i32, %arg1: i32, %arg2: memref<1xi32, #tpu.memory_space<smem>>, %arg3: memref<1xi32, #tpu.memory_space<smem>>) -> (i32, i32, i32) {
    %c0_i32 = arith.constant 0 : i32
    %c0_i32_0 = arith.constant 0 : i32
    %c0_i32_1 = arith.constant 0 : i32
    return %arg0, %c0_i32, %c0_i32_0 : i32, i32, i32
  }
}

</mosaic_0001>

<bundles_post_ra>
// kernel: tpu_custom_call.1
= control target key start
LH: loop header
LB: loop body
LE: loop exit
PB: predicated region body
PF: predicated region fallthrough
CT: control target
= control target key end

     0   :  { %20 = vsyncpa [#allocation13], 0  ;;  %s1034_s0 = inlined_call_operand.<no memory space> [shape: s32[1], index: 0, kind: input, shape index: {}]   ;;  %s1035_s1 = inlined_call_operand.<no memory space> [shape: s32[1], index: 1, kind: input, shape index: {}]   ;;  %s1036_s2 = inlined_call_operand.vmem [shape: f32[16,128], index: 2, kind: input, shape index: {}]   ;;  %s1037_s3 = inlined_call_operand.vmem [shape: s32[1,16], index: 3, kind: input, shape index: {}]   ;;  %s1038_s4 = inlined_call_operand.vmem [shape: s32[16,1], index: 4, kind: input, shape index: {}]   ;;  %s1039_s5 = inlined_call_operand.vmem [shape: f32[128,32], index: 5, kind: input, shape index: {}]   ;;  %s1040_s6 = inlined_call_operand.vmem [shape: f32[1,32], index: 6, kind: input, shape index: {}]   ;;  %s1041_s7 = inlined_call_operand.vmem [shape: f32[1,32], index: 7, kind: input, shape index: {}]   ;;  %s1042_s8 = inlined_call_operand.<no memory space> [shape: f32[1,1], index: 8, kind: input, shape index: {}]   ;;  %s1043_s9 = inlined_call_operand.hbm [shape: f32[1,2,384], index: 9, kind: output, shape index: {0}]   ;;  %s1044_s10 = inlined_call_operand.hbm [shape: f32[1,1,2], index: 10, kind: output, shape index: {1}]   ;;  %s1045_s11 = inlined_call_operand.vmem [shape: f32[1,2,1], index: 11, kind: output, shape index: {2}]  }
   0x1   :  { %21 = vsyncpa [#allocation15], 0  ;;  %v109_v0 = vld [vmem:[%s1039_s5] sm:$0xff]  ;;  %v110_v1 = vld [vmem:[%s1039_s5 + $0x8] sm:$0xff]  ;;  %vm218_vm0 = vcmask 261120   ;;  %v226_v38 = vstv %s1042_s8  ;;  %vm246_vm3 = vcmask 7168   ;;  %v232_v61 = vlaneseq }
   0x2   :  { %v692_v2 = vpack.c.bf16 %v110_v1, %v109_v0  ;;  %v111_v3 = vld [vmem:[%s1039_s5 + $0x10] sm:$0xff]  ;;  %v112_v4 = vld [vmem:[%s1039_s5 + $0x18] sm:$0xff]  ;;  %v113_v6 = vld [vmem:[%s1039_s5 + $0x20] sm:$0xff]  ;;  %vm101_vm4 = vcmask 0   ;;  %v802_v50 = vmov -inf   ;;  %v803_v51 = vmov 0  }
   0x3   :  { %v696_v5 = vpack.c.bf16 %v112_v4, %v111_v3  ;;  %v114_v7 = vld [vmem:[%s1039_s5 + $0x28] sm:$0xff]  ;;  %v893_v9 = vld [vmem:[%s1036_s2] sm:$0xff]  ;;  %v115_v10 = vld [vmem:[%s1039_s5 + $0x30] sm:$0xff]  ;;  %102 = vst.msk [vmem:[#allocation2] sm:$0x1] %vm101_vm4, %v802_v50  ;;  %745 = vset.pattern.permute.xlu0 %v803_v51  ;;  %744 = vset.pattern.permute.xlu1 %v803_v51  ;;  %v804_v52 = vmov 0.0  }
   0x4   :  { %693 = vmatprep.subr.bf16.mxu0 %v692_v2  ;;  %v700_v8 = vpack.c.bf16 %v114_v7, %v113_v6  ;;  %v116_v11 = vld [vmem:[%s1039_s5 + $0x38] sm:$0xff]  ;;  %675 = vmatprep.mubr.f32.mxu0 %v893_v9  ;;  %v117_v13 = vld [vmem:[%s1039_s5 + $0x40] sm:$0xff]  ;;  %v118_v14 = vld [vmem:[%s1039_s5 + $0x48] sm:$0xff]  ;;  %106 = vst [vmem:[#allocation6] sm:$0x3] %v802_v50  ;;  %v805_v60 = vmov 0.0|0.0  }
   0x5   :  { %695 = vmatpush3.bf16.msra.mxu0 %v692_v2  ;;  %v704_v12 = vpack.c.bf16 %v116_v11, %v115_v10  ;;  %v708_v15 = vpack.c.bf16 %v118_v14, %v117_v13  ;;  %v119_v16 = vld [vmem:[%s1039_s5 + $0x50] sm:$0xff]  ;;  %v120_v17 = vld [vmem:[%s1039_s5 + $0x58] sm:$0xff]  ;;  %v121_v19 = vld [vmem:[%s1039_s5 + $0x60] sm:$0xff]  ;;  %104 = vst [vmem:[#allocation4] sm:$0x3] %v804_v52  ;;  %724 = vmatprep.subr.bf16.mxu1 %v805_v60  ;;  %v233_v62 = vshrl.u32 %v232_v61, 7 }
   0x6   :  { %697 = vmatprep.subr.bf16.mxu0 %v696_v5  ;;  %v712_v18 = vpack.c.bf16 %v120_v17, %v119_v16  ;;  %v122_v20 = vld [vmem:[%s1039_s5 + $0x68] sm:$0xff]  ;;  %v123_v22 = vld [vmem:[%s1039_s5 + $0x70] sm:$0xff]  ;;  %v124_v23 = vld [vmem:[%s1039_s5 + $0x78] sm:$0xff]  ;;  %103 = vst.msk [vmem:[#allocation3] sm:$0x1] %vm101_vm4, %v804_v52  ;;  %vm806_vm7 = vmmov 0  }
   0x7   :  { %v716_v21 = vpack.c.bf16 %v122_v20, %v121_v19  ;;  %v720_v24 = vpack.c.bf16 %v124_v23, %v123_v22  ;;  %v929_v25 = vld [vmem:[%s1036_s2 + $0x8] sm:$0xff]  ;;  %v612_v26 = vld [vmem:[%s1040_s6] ss:$0 sm:$0xff]  ;;  %105 = vst [vmem:[#allocation5] sm:$0x3] %v804_v52  ;;  %v271_v2 = vsub.s32 0, %v233_v62  ;;  %682 = vmatprep.mubr.msk.f32.mxu1 %vm806_vm7, %v804_v52 }
   0x8   :  { %v613_v31 = vld [vmem:[%s1041_s7] ss:$0 sm:$0xff]  ;;  %v949_v42 = vld [vmem:[%s1038_s4 + $0x8] sm:$0xff]  ;;  %v725_v10 = vpack.c.bf16 %v929_v25, %v893_v9  ;;  %vm280_vm8 = vcmask 130048   ;;  %vm472_vm10 = vcmask 123904   ;;  %vm107_vm11 = vcmask 1024  }
   0x9   :  { %699 = vmatpush3.bf16.msra.mxu0 %v696_v5  ;;  %v944_v39 = vld [vmem:[%s1038_s4] sm:$0xff]  ;;  %vm242_vm2 = vcmp.lt.s32.totalorder %v949_v42, 2  ;;  %108 = vst.msk [vmem:[#allocation7] sm:$0x3] %vm107_vm11, %v804_v52  ;;  %p481_p0 = scmp.le.s32.totalorder %s1034_s0, 0  ;;  %p482_p1 = scmp.ge.s32.totalorder %s1035_s1, 0 }
   0xa   :  { %701 = vmatprep.subr.bf16.mxu0 %v700_v8  ;;  %vm241_vm1 = vcmp.lt.s32.totalorder %v944_v39, 2  ;;  %v245_v63 = vld [vmem:[#allocation2] sm:$0x1]  ;;  %726 = vmatpush3.bf16.msra.mxu1 %v725_v10 }
   0xb   :  { %v614_v13 = vld [vmem:[%s1037_s3] ss:$0 sm:$0xff]  ;;  %727 = vmatprep.subr.bf16.mxu1 %v805_v60  ;;  %vm263_vm9 = vcmp.gt.f32.partialorder %v245_v63, -inf  ;;  %p984_p2 = pnand %p482_p1, %p481_p0 }
   0xc   :  { %vm238_vm6 = vcmp.eq.s32.totalorder %v233_v62, %v614_v13  ;;  %v439_v50 = vld [vmem:[#allocation4] sm:$0x3]  ;;  %vm487_vm12 = vcmp.eq.s32.totalorder (!%p984_p2), %v944_v39, 0  ;;  %vm488_vm13 = vcmp.eq.s32.totalorder (!%p984_p2), %v949_v42, 0 }
   0xd   :  { %703 = vmatpush3.bf16.msra.mxu0 %v700_v8  ;;  %v615_v14 = vsel %vm238_vm6, 1.0, %v804_v52 }
   0xe   :  { %705 = vmatprep.subr.bf16.mxu0 %v704_v12  ;;  %683 = vmatmul.mubr.msk.f32.vlgmr.msra.gmra.mrb[0].mxu1 %vm280_vm8, %v615_v14  ;;  %v473_v23 = vsel %vm472_vm10, %v615_v14, 0.0 }
   0xf   :  { %689 = vmatprep.mubr.msk.f32.mxu1 %vm806_vm7, %v804_v52 }
  0x11   :  { %707 = vmatpush3.bf16.msra.mxu0 %v704_v12 }
  0x12   :  { %709 = vmatprep.subr.bf16.mxu0 %v708_v15 }
  0x15   :  { %711 = vmatpush3.bf16.msra.mxu0 %v708_v15 }
  0x16   :  { %713 = vmatprep.subr.bf16.mxu0 %v712_v18 }
  0x19   :  { %715 = vmatpush3.bf16.msra.mxu0 %v712_v18 }
  0x1a   :  { %717 = vmatprep.subr.bf16.mxu0 %v716_v21 }
  0x1d   :  { %719 = vmatpush3.bf16.msra.mxu0 %v716_v21 }
  0x1e   :  { %721 = vmatprep.subr.bf16.mxu0 %v720_v24 }
  0x21   :  { %723 = vmatpush3.bf16.msra.mxu0 %v720_v24 }
  0x24   :  { %676 = vmatmul.mubr.f32.vlgmr.msra.gmra.mrb[0].mxu0 %v929_v25 }
  0xf7   :  { %v677_v27 = vpop.f32.mrb[0].mxu0 }
  0xf8   :  { %v204_v28 = vadd.f32 %v677_v27, %v612_v26  ;;  %v198_v29 = vpop.f32.mrb[1].mxu0 }
  0xf9   :  { %v199_v30 = vadd.f32 %v612_v26, %v198_v29 }
  0xfa   :  { %v208_v32 = vmax.f32 %v204_v28, 0.0 }
  0xfb   :  { %v207_v33 = vmax.f32 %v199_v30, 0.0 }
  0xfc   :  { %v217_v36 = vmul.f32 %v613_v31, %v208_v32 }
  0xfd   :  { %v216_v34 = vmul.f32 %v613_v31, %v207_v33 }
  0xfe   :  { %v222_v37 = vsel %vm218_vm0, %v217_v36, 0.0 }
  0xff   :  { %v219_v35 = vsel %vm218_vm0, %v216_v34, 0.0 }
 0x100   :  { %220 = vadd.xlane.f32.xlu0 %v219_v35 }
 0x104   :  { %223 = vadd.xlane.f32.xlu0 %v222_v37  ;;  %v436_v37 = vld [vmem:[#allocation5] sm:$0x3] }
 0x18d   :  { %v221_v40 = vpop.xlane.xlu0 %220 }
 0x18e   :  { %v227_v41 = vadd.f32 %v226_v38, %v221_v40 }
 0x190   :  { %v243_v45 = vsel %vm241_vm1, %v227_v41, -inf }
 0x191   :  { %v224_v43 = vpop.xlane.xlu0 %223  ;;  %v247_v47 = vsel %vm246_vm3, %v243_v45, -inf }
 0x192   :  { %v228_v44 = vadd.f32 %v226_v38, %v224_v43  ;;  %v350_v38 = vpop.f32.mrb[0].mxu1  ;;  %v471_v43 = vld [vmem:[#allocation7] sm:$0x3] }
 0x193   :  { %v437_v40 = vadd.f32 %v436_v37, %v350_v38  ;;  %v684_v41 = vpop.f32.mrb[1].mxu1 }
 0x194   :  { %v244_v46 = vsel %vm242_vm2, %v228_v44, -inf }
 0x195   :  { %v248_v48 = vsel %vm246_vm3, %v244_v46, -inf  ;;  %438 = vst [vmem:[#allocation5] sm:$0x3] %v437_v40 }
 0x196   :  { %v249_v49 = vmax.f32 %v247_v47, %v248_v48 }
 0x198   :  { %250 = vmax.xlane.f32.xlu1 %v249_v49 }
 0x225   :  { %v251_v53 = vpop.xlane.xlu1 %250 }
 0x226   :  { %v252_v54 = vrot.slane %v251_v53, 4 }
 0x228   :  { %v253_v55 = vmax.f32 %v251_v53, %v252_v54 }
 0x22a   :  { %v254_v56 = vrot.slane %v253_v55, 2 }
 0x22c   :  { %v255_v57 = vmax.f32 %v253_v55, %v254_v56  ;;  %v807_v56 = vmov (!%p984_p2), 0  }
 0x22e   :  { %v256_v58 = vrot.slane %v255_v57, 1 }
 0x230   :  { %v257_v59 = vmax.f32 %v255_v57, %v256_v58  ;;  %v489_v57 = vsel (!%p984_p2), %vm487_vm12, 1, %v807_v56  ;;  %v490_v58 = vsel (!%p984_p2), %vm488_vm13, 1, %v807_v56 }
 0x232   :  { %730 = vpush %v257_v59 }
 0x263   :  { %s731_s4 = spop %730 }
 0x264   :  { %v259_v0 = vstv %s731_s4 }
 0x265   :  { %v260_v1 = vmax.f32 %v245_v63, %v259_v0 }
 0x267   :  { %vm261_vm5 = vcmp.gt.f32.partialorder %v260_v1, -inf  ;;  %470 = vst.msk [vmem:[#allocation2] sm:$0x1] %vm101_vm4, %v260_v1 }
 0x268   :  { %v262_v3 = vsel %vm261_vm5, %v260_v1, 0.0 }
 0x269   :  { %v272_v4 = vrot.slane %v262_v3, %v271_v2  ;;  %v264_v15 = vsub.f32 %v245_v63, %v262_v3 }
 0x26b   :  { %v274_v5 = vsub.f32 %v243_v45, %v272_v4  ;;  %v275_v6 = vsub.f32 %v244_v46, %v272_v4  ;;  %v265_v16 = vmul.f32 1.442695, %v264_v15  ;;  %v452_v46 = vld [vmem:[#allocation3] sm:$0x1] }
 0x26d   :  { %v276_v7 = vmul.f32 1.442695, %v274_v5  ;;  %v278_v8 = vmul.f32 1.442695, %v275_v6  ;;  %v508_v5 = vld [vmem:[#allocation6] sm:$0x1] (!%p984_p2) }
 0x26f   :  { %746 = vpow2.f32 %v276_v7 }
 0x270   :  { %748 = vpow2.f32 %v278_v8 }
 0x271   :  { %750 = vpow2.f32 %v265_v16 }
 0x279   :  { %v747_v11 = vpop.eup %746 }
 0x27a   :  { %v749_v12 = vpop.eup %748  ;;  %356 = vperm.xlu1 %744, %v747_v11   ;;  %v454_v17 = vsel %vm246_vm3, %v747_v11, 0.0 }
 0x27b   :  { %361 = vperm.xlu0 %745, %v749_v12   ;;  %v455_v18 = vsel %vm246_vm3, %v749_v12, 0.0  ;;  %v751_v20 = vpop.eup %750 }
 0x27c   :  { %v456_v19 = vadd.f32 %v455_v18, %v454_v17  ;;  %v267_v21 = vsel %vm263_vm9, %v751_v20, 0.0 }
 0x27d   :  { %v444_v22 = vrot.slane %v267_v21, %v271_v2  ;;  %v453_v47 = vmul.f32 %v452_v46, %v267_v21 }
 0x27f   :  { %752 = vset.pattern.permute.xlu0 (!%p984_p2), %v807_v56 }
 0x29a   :  { %474 = vadd.xlane.f32.xlu0 %v473_v23 }
 0x29e   :  { %457 = vadd.xlane.f32.xlu1 %v456_v19 }
 0x2af   :  { %446 = vperm.xlu1 %744, %v444_v22  }
 0x2b0   :  { %492 = vperm.xlu0 (!%p984_p2), %752, %v489_v57  }
 0x2b4   :  { %495 = vperm.xlu0 (!%p984_p2), %752, %v490_v58  }
 0x2f9   :  { %v357_v24 = vpop.permute.xlu1 %356 }
 0x2fa   :  { %v362_v26 = vpop.permute.xlu0 %361  ;;  %v364_v27 = vmul.f32 %v357_v24, %v893_v9 }
 0x2fb   :  { %v365_v28 = vmul.f32 %v362_v26, %v929_v25 }
 0x2fd   :  { %v728_v29 = vpack.c.bf16 %v365_v28, %v364_v27 }
 0x2ff   :  { %729 = vmatpush3.bf16.msra.mxu1 %v728_v29 }
 0x302   :  { %690 = vmatmul.mubr.msk.f32.vlgmr.msra.gmra.mrb[2].mxu1 %vm280_vm8, %v615_v14 }
 0x327   :  { %v475_v44 = vpop.xlane.xlu0 %474 }
 0x328   :  { %v476_v45 = vadd.f32 %v475_v44, %v471_v43 }
 0x32a   :  { %478 = vst.msk [vmem:[#allocation7] sm:$0x3] %vm107_vm11, %v476_v45 }
 0x32b   :  { %v458_v30 = vpop.xlane.xlu1 %457 }
 0x32c   :  { %v459_v31 = vrot.slane %v458_v30, 4 }
 0x32e   :  { %v460_v32 = vadd.f32 %v459_v31, %v458_v30 }
 0x32f   :  { %v447_v51 = vpop.permute.xlu1 %446  ;;  %v493_v59 = vpop.permute.xlu0 (!%p984_p2), %492 }
 0x330   :  { %v461_v33 = vrot.slane %v460_v32, 2  ;;  %v449_v52 = vmul.f32 %v447_v51, %v439_v50  ;;  %vm497_vm14 = vcmp.eq.s32.totalorder (!%p984_p2), %v493_v59, 1 }
 0x331   :  { %v499_v61 = vsel (!%p984_p2), %vm497_vm14, %v893_v9, -inf }
 0x332   :  { %v462_v34 = vadd.f32 %v461_v33, %v460_v32 }
 0x333   :  { %v496_v60 = vpop.permute.xlu0 (!%p984_p2), %495 }
 0x334   :  { %v463_v35 = vrot.slane %v462_v34, 1  ;;  %vm498_vm15 = vcmp.eq.s32.totalorder (!%p984_p2), %v496_v60, 1 }
 0x335   :  { %v500_v62 = vsel (!%p984_p2), %vm498_vm15, %v929_v25, -inf }
 0x336   :  { %v464_v36 = vadd.f32 %v463_v35, %v462_v34  ;;  %v501_v63 = vmax.f32 (!%p984_p2), %v499_v61, %v500_v62 }
 0x338   :  { %732 = vpush %v464_v36  ;;  %v502_v0 = vrot.slane (!%p984_p2), %v501_v63, 4 }
 0x33a   :  { %v503_v1 = vmax.f32 (!%p984_p2), %v501_v63, %v502_v0 }
 0x33c   :  { %v504_v2 = vrot.slane (!%p984_p2), %v503_v1, 2 }
 0x33e   :  { %v505_v3 = vmax.f32 (!%p984_p2), %v503_v1, %v504_v2 }
 0x340   :  { %v506_v4 = vrot.slane (!%p984_p2), %v505_v3, 1 }
 0x342   :  { %v507_v6 = vmax.f32 (!%p984_p2), %v505_v3, %v506_v4 }
 0x344   :  { %v509_v7 = vmax.f32 (!%p984_p2), %v508_v5, %v507_v6 }
 0x346   :  { %510 = vst [vmem:[#allocation6] sm:$0x1] (!%p984_p2), %v509_v7 }
 0x369   :  { %s733_s26 = spop %732 }
 0x36a   :  { %v466_v48 = vstv %s733_s26 }
 0x36b   :  { %v467_v49 = vadd.f32 %v466_v48, %v453_v47 }
 0x36d   :  { %469 = vst.msk [vmem:[#allocation3] sm:$0x1] %vm101_vm4, %v467_v49 }
 0x3d2   :  { %486 = sbr.rel (%p984_p2) target bundleno = 985 (0x3d9), region = 37 }
 0x3d5   :  { %v432_v53 = vpop.f32.mrb[2].mxu1 }
 0x3d6   :  { %v450_v54 = vadd.f32 %v449_v52, %v432_v53  ;;  %v691_v55 = vpop.f32.mrb[3].mxu1 }
 0x3d8   :  { %451 = vst [vmem:[#allocation4] sm:$0x3] %v450_v54 }
 0x3d9 PF:  { %p511_p3 = scmp.le.s32.totalorder %s1034_s0, 1  ;;  %p512_p4 = scmp.ge.s32.totalorder %s1035_s1, 1 }
 0x3db   :  { %p513_p5 = pnand %p512_p4, %p511_p3 }
 0x3dc   :  { %vm517_vm0 = vcmp.eq.s32.totalorder (!%p513_p5), %v944_v39, 1  ;;  %vm518_vm1 = vcmp.eq.s32.totalorder (!%p513_p5), %v949_v42, 1  ;;  %v808_v8 = vmov (!%p513_p5), 0   ;;  %v538_v20 = vld [vmem:[#allocation6 + $0x1] sm:$0x1] (!%p513_p5) }
 0x3dd   :  { %516 = sbr.rel (%p513_p5) target bundleno = 1141 (0x475), region = 41  ;;  %753 = vset.pattern.permute.xlu0 (!%p513_p5), %v808_v8  ;;  %v519_v10 = vsel (!%p513_p5), %vm517_vm0, 1, %v808_v8  ;;  %v520_v11 = vsel (!%p513_p5), %vm518_vm1, 1, %v808_v8 }
 0x3de   :  { %522 = vperm.xlu0 (!%p513_p5), %753, %v519_v10  }
 0x3e2   :  { %525 = vperm.xlu0 (!%p513_p5), %753, %v520_v11  }
 0x45d   :  { %v523_v12 = vpop.permute.xlu0 %522 }
 0x45e   :  { %vm527_vm2 = vcmp.eq.s32.totalorder %v523_v12, 1 }
 0x45f   :  { %v529_v14 = vsel %vm527_vm2, %v893_v9, -inf }
 0x461   :  { %v526_v13 = vpop.permute.xlu0 %525 }
 0x462   :  { %vm528_vm3 = vcmp.eq.s32.totalorder %v526_v13, 1 }
 0x463   :  { %v530_v15 = vsel %vm528_vm3, %v929_v25, -inf }
 0x464   :  { %v531_v16 = vmax.f32 %v529_v14, %v530_v15 }
 0x466   :  { %v532_v17 = vrot.slane %v531_v16, 4 }
 0x468   :  { %v533_v18 = vmax.f32 %v531_v16, %v532_v17 }
 0x46a   :  { %v534_v39 = vrot.slane %v533_v18, 2 }
 0x46c   :  { %v535_v19 = vmax.f32 %v533_v18, %v534_v39 }
 0x46e   :  { %v536_v42 = vrot.slane %v535_v19, 1 }
 0x470   :  { %v537_v21 = vmax.f32 %v535_v19, %v536_v42 }
 0x472   :  { %v539_v22 = vmax.f32 %v538_v20, %v537_v21 }
 0x474   :  { %540 = vst [vmem:[#allocation6 + $0x1] sm:$0x1] %v539_v22 }
 0x475 PF:  { %v618_v23 = vld [vmem:[#allocation3] ss:$0 sm:$0xff]  ;;  %v544_v24 = vld [vmem:[#allocation4] sm:$0x3]  ;;  %s809_s0 = smov 1   ;;  %s810_s13 = smov [#allocation12]  }
 0x476   :  { %558 = vrot.lane.b32.xlu0 %v618_v23, %s809_s0  ;;  %545 = vst [vmem:[#allocation12] sm:$0x3] %v544_v24  ;;  %v548_v9 = vld [vmem:[#allocation5] sm:$0x3]  ;;  %v563_v27 = vld [vmem:[#allocation7] sm:$0x3] }
 0x477   :  { %549 = vst [vmem:[#allocation12 + $0x4] sm:$0x3] %v548_v9  ;;  %564 = vst.msk [vmem:[%s1045_s11] sm:$0x3] %vm107_vm11, %v563_v27  ;;  %s571_s14 = sshll.u32 %s810_s13, 4  ;;  %s572_s14 = int_to_ptr.vmem [resolvable:$true] %s571_s14 }
 0x478   :  { %v550_v25 = vld [vmem:[#allocation2] sm:$0x1]  ;;  %s754_s15 = scalar_lea.vmem %s572_s14, 96  ;;  %p759_p7 = scmp.lt.s32.totalorder %s572_s14, %s572_s14 }
 0x479   :  { %551 = vst.msk [vmem:[#allocation14] sm:$0x1] %vm101_vm4, %v550_v25  ;;  %p755_p6 = scmp.ne.s32.totalorder %s572_s14, %s754_s15  ;;  %p760_p8 = scmp.lt.s32.totalorder %s754_s15, %s754_s15 }
 0x47b   :  { %v546_v26 = vld [vmem:[#allocation6] sm:$0x3]  ;;  %p761_p9 = por %p760_p8, %p759_p7 }
 0x47c   :  { %547 = vst [vmem:[#allocation12 + $0x2] sm:$0x3] %v546_v26 }
 0x47d   :  { %p762_p10 = pnand %p761_p9, %p755_p6 }
 0x47f   :  { %765 = shalt.err (!%p762_p10)
}
 0x480   :  { %s766_s17 = scalar_lea.hbm %s1043_s9, 96 }
 0x481   :  { %p767_p11 = scmp.ne.s32.totalorder %s1043_s9, %s766_s17  ;;  %p770_p12 = scmp.lt.u32.totalorder %s766_s17, %s1043_s9 }
 0x483   :  { %p772_p13 = pnand %p770_p12, %p767_p11 }
 0x485   :  { %775 = shalt.err (!%p772_p13)
}
 0x486   :  { %574 = dma.vmem_to_hbm [thread:$0]  %s572_s14, 96, %s1043_s9, [#allocation13]   ;;  %vm561_vm4 = vcmask 8200  }
 0x487   :  { %s811_s20 = smov [#allocation14]  }
 0x488   :  { %s581_s4 = sshll.u32 %s811_s20, 4  ;;  %s582_s4 = int_to_ptr.vmem [resolvable:$true] %s581_s4 }
 0x489   :  { %s776_s8 = scalar_lea.vmem %s582_s4, 16  ;;  %s780_s21 = scalar_lea.vmem %s582_s4, 32 }
 0x48a   :  { %p777_p0 = scmp.ne.s32.totalorder %s582_s4, %s776_s8  ;;  %p781_p1 = scmp.lt.s32.totalorder %s582_s4, %s582_s4 }
 0x48b   :  { %p782_p2 = scmp.lt.s32.totalorder %s780_s21, %s776_s8 }
 0x48d   :  { %p783_p3 = por %p782_p2, %p781_p1 }
 0x48f   :  { %p784_p4 = pnand %p783_p3, %p777_p0 }
 0x4e8   :  { %v559_v28 = vpop.permute.xlu0 %558 }
 0x4e9   :  { %562 = vst.msk [vmem:[#allocation14] sm:$0x1] %vm561_vm4, %v559_v28 }
 0x4ea   :  { %787 = shalt.err (!%p784_p4)
}
 0x4eb   :  { %s788_s23 = scalar_lea.hbm %s1044_s10, 16 }
 0x4ec   :  { %p789_p5 = scmp.ne.s32.totalorder %s1044_s10, %s788_s23  ;;  %p792_p6 = scmp.lt.u32.totalorder %s788_s23, %s1044_s10 }
 0x4ee   :  { %p794_p7 = pnand %p792_p6, %p789_p5 }
 0x4f0   :  { %797 = shalt.err (!%p794_p7)
}
 0x4f1   :  { %584 = dma.vmem_to_hbm [thread:$0]  %s582_s4, 16, %s1044_s10, [#allocation15]  }
 0x4f2   :  { %798 = dma.done.wait [#allocation13], 96  }
 0x4f3   :  { %799 = vsyncadd [#allocation13], 4294967200 }
 0x4f4   :  { %800 = dma.done.wait [#allocation15], 16  }
 0x4f5   :  { %801 = vsyncadd [#allocation15], 4294967280 }
 0x4f6   :  { %595 = vsyncpa [#allocation13], 1 }
 0x4f7   :  { %596 = vsyncpa [#allocation15], 1 }

</bundles_post_ra>
